<compile_context>
chip_gen: v6e
topology: v6e:2x2x1
jax: 0.10.0
libtpu: 0.0.40
codegen_flags: <defaults>
</compile_context>

<pallas_src>
import functools
import math

import jax
import jax.numpy as jnp
from jax.experimental import pallas as pl
from jax.experimental.pallas import tpu as pltpu

# ---- module "parameters" (deterministic, from __init__) --------------------
MIN_DEG = 0
MAX_DEG = 5
HALF_PI = 0.5 * math.pi

_LANE_TILE = 2048   # max rows per grid step on the lane axis; multiple of 128


def _round_up(v, m):
    return (v + m - 1) // m * m


def _make_scales(min_deg, max_deg):
    return [float(2 ** i) for i in range(min_deg, max_deg)]


# ---- kernels (feature-major: features on sublanes, rows on lanes) ----------
def _pe_kernel_x(x_ref, out_ref, *, scales):
    # x_ref: [D, T]   out_ref: [2*L*D + D, T]
    D = x_ref.shape[0]
    L = len(scales)
    x = x_ref[...].astype(jnp.float32)
    odt = out_ref.dtype
    sn = cs = None
    prev_s = None
    for k, s in enumerate(scales):
        if k % 2 == 1 and prev_s is not None and s == 2.0 * prev_s:
            # exact double-angle step (depth-1 only): reuses previous sin/cos,
            # avoids two trig polynomial expansions on the VPU.
            sn, cs = 2.0 * sn * cs, 1.0 - 2.0 * sn * sn
        else:
            a = x * s
            sn = jnp.sin(a)
            cs = jnp.cos(a)          # == sin(a + pi/2)
        prev_s = s
        lo = k * D
        out_ref[lo:lo + D, :] = sn.astype(odt)
        out_ref[L * D + lo:L * D + lo + D, :] = cs.astype(odt)
    out_ref[2 * L * D:2 * L * D + D, :] = x.astype(odt)


def _pe_kernel_xy(x_ref, y_ref, xo_ref, yo_ref, *, scales):
    # x_ref, y_ref: [D, T]; xo_ref: [2*L*D + D, T]; yo_ref: [2*L*D, T]
    D = x_ref.shape[0]
    L = len(scales)
    x = x_ref[...].astype(jnp.float32)
    y = y_ref[...].astype(jnp.float32)
    xdt = xo_ref.dtype
    ydt = yo_ref.dtype
    for k, s in enumerate(scales):
        a = x * s                               # x_enc block (first half)
        e = jnp.exp(y * (-0.5 * s * s))         # exp(-0.5 * y_enc), EUP
        sn = jnp.sin(a)
        cs = jnp.cos(a)                         # sin(a + pi/2)
        e2 = e * e
        e4 = e2 * e2                            # exp(-2 * y_enc)
        cos2a = 1.0 - 2.0 * sn * sn             # cos(2a)
        xr1 = e * sn
        xr2 = e * cs
        y1 = jnp.maximum(0.0, 0.5 - 0.5 * (e4 * cos2a) - xr1 * xr1)
        # second half of x_enc is a + pi/2, so cos(2*(a + pi/2)) = -cos(2a)
        y2 = jnp.maximum(0.0, 0.5 + 0.5 * (e4 * cos2a) - xr2 * xr2)
        lo = k * D
        hi = lo + D
        xo_ref[lo:hi, :] = xr1.astype(xdt)
        xo_ref[L * D + lo:L * D + hi, :] = xr2.astype(xdt)
        yo_ref[lo:hi, :] = y1.astype(ydt)
        yo_ref[L * D + lo:L * D + hi, :] = y2.astype(ydt)
    xo_ref[2 * L * D:2 * L * D + D, :] = x.astype(xdt)


# ---- wrapper ---------------------------------------------------------------
def positional_encoding(x, y=None, min_deg=MIN_DEG, max_deg=MAX_DEG):
    """Pallas equivalent of PositionalEncoding.forward(x, y)."""
    scales = _make_scales(min_deg, max_deg)
    L = len(scales)
    orig_shape = x.shape
    D = int(orig_shape[-1])
    N = 1
    for s in orig_shape[:-1]:
        N *= int(s)
    out_w = 2 * L * D + D
    var_w = 2 * L * D

    # Feature-major layout: [D, N] so rows live on the (dense) lane axis.
    xT = jnp.swapaxes(x.reshape(N, D), 0, 1)

    # Lane tile: multiple of 128, at most _LANE_TILE, shrunk (power-of-two
    # steps) if the tail padding would be more than ~25% of the work.
    n_pad128 = _round_up(max(N, 1), 128)
    tile_n = min(_LANE_TILE, n_pad128)
    if tile_n == _LANE_TILE:
        while tile_n > 128 and (_round_up(N, tile_n) - N) * 4 > n_pad128:
            tile_n //= 2
    Np = _round_up(max(N, 1), tile_n)
    if Np != N:                                 # pad only the cheap input axis
        xT = jnp.pad(xT, ((0, 0), (0, Np - N)))
    grid = (Np // tile_n,)

    in_spec = pl.BlockSpec((D, tile_n), lambda i: (0, i))
    xo_spec = pl.BlockSpec((out_w, tile_n), lambda i: (0, i))
    yo_spec = pl.BlockSpec((var_w, tile_n), lambda i: (0, i))
    cparams = pltpu.CompilerParams(dimension_semantics=("parallel",))

    if y is None:
        cost = pl.CostEstimate(
            flops=6 * N * L * D,
            transcendentals=2 * N * L * D,
            bytes_accessed=4 * N * (D + out_w),
        )
        out = pl.pallas_call(
            functools.partial(_pe_kernel_x, scales=scales),
            grid=grid,
            in_specs=[in_spec],
            out_specs=xo_spec,
            out_shape=jax.ShapeDtypeStruct((out_w, Np), x.dtype),
            compiler_params=cparams,
            cost_estimate=cost,
        )(xT)
        # the :N slice folds into the transpose copy (no extra HBM pass)
        out = jnp.swapaxes(out[:, :N], 0, 1)
        return out.reshape(*orig_shape[:-1], out_w)

    yT = jnp.swapaxes(y.reshape(N, D), 0, 1)
    if Np != N:
        yT = jnp.pad(yT, ((0, 0), (0, Np - N)))

    cost = pl.CostEstimate(
        flops=20 * N * L * D,
        transcendentals=3 * N * L * D,
        bytes_accessed=4 * N * (2 * D + out_w + var_w),
    )
    x_ret, y_ret = pl.pallas_call(
        functools.partial(_pe_kernel_xy, scales=scales),
        grid=grid,
        in_specs=[in_spec, in_spec],
        out_specs=[xo_spec, yo_spec],
        out_shape=(
            jax.ShapeDtypeStruct((out_w, Np), x.dtype),
            jax.ShapeDtypeStruct((var_w, Np), x.dtype),
        ),
        compiler_params=cparams,
        cost_estimate=cost,
    )(xT, yT)
    x_ret = jnp.swapaxes(x_ret[:, :N], 0, 1).reshape(*orig_shape[:-1], out_w)
    y_ret = jnp.swapaxes(y_ret[:, :N], 0, 1).reshape(*orig_shape[:-1], var_w)
    return x_ret, y_ret


# ---- pure-JAX reference (mirrors the PyTorch code) --------------------------
def _ref_forward(x, y=None, min_deg=MIN_DEG, max_deg=MAX_DEG):
    scales = jnp.asarray(_make_scales(min_deg, max_deg), dtype=x.dtype)
    shape = list(x.shape[:-1]) + [-1]
    x_enc = (x[..., None, :] * scales[:, None]).reshape(shape)
    x_enc = jnp.concatenate((x_enc, x_enc + 0.5 * jnp.pi), -1)
    if y is not None:
        y_enc = (y[..., None, :] * (scales[:, None] ** 2)).reshape(shape)
        y_enc = jnp.concatenate((y_enc, y_enc), -1)
        x_ret = jnp.exp(-0.5 * y_enc) * jnp.sin(x_enc)
        y_ret = jnp.maximum(
            jnp.zeros_like(y_enc),
            0.5 * (1 - jnp.exp(-2 * y_enc) * jnp.cos(2 * x_enc)) - x_ret ** 2,
        )
        x_ret = jnp.concatenate([x_ret, x], axis=-1)
        return x_ret, y_ret
    x_ret = jnp.sin(x_enc)
    return jnp.concatenate([x_ret, x], axis=-1)


if __name__ == "__main__":
    key = jax.random.PRNGKey(0)
    kx, ky = jax.random.split(key)

    # small shapes consistent with the module (batch of 3-D coords + variances);
    # N = 2*64 = 128 rows -> single full tile, no padding.
    x = jax.random.normal(kx, (2, 64, 3), dtype=jnp.float32)
    y = jax.random.uniform(ky, (2, 64, 3), dtype=jnp.float32)

    # x-only branch
    out = jax.block_until_ready(positional_encoding(x))
    ref = _ref_forward(x)
    assert out.shape == ref.shape, (out.shape, ref.shape)
    assert jnp.allclose(out, ref, atol=1e-5, rtol=1e-5)

    # (x, y) IPE branch
    xr, yr = positional_encoding(x, y)
    xr = jax.block_until_ready(xr)
    yr = jax.block_until_ready(yr)
    xr_ref, yr_ref = _ref_forward(x, y)
    assert xr.shape == xr_ref.shape and yr.shape == yr_ref.shape
    assert jnp.allclose(xr, xr_ref, atol=1e-5, rtol=1e-5)
    assert jnp.allclose(yr, yr_ref, atol=1e-5, rtol=1e-5)

    # ragged row count (exercises the pad/slice path)
    x2 = jax.random.normal(kx, (3, 20, 3), dtype=jnp.float32)   # N = 60
    y2 = jax.random.uniform(ky, (3, 20, 3), dtype=jnp.float32)
    xr2, yr2 = positional_encoding(x2, y2)
    xr2 = jax.block_until_ready(xr2)
    xr2_ref, yr2_ref = _ref_forward(x2, y2)
    assert jnp.allclose(xr2, xr2_ref, atol=1e-5, rtol=1e-5)
    assert jnp.allclose(yr2, yr2_ref, atol=1e-5, rtol=1e-5)

    # multi-step grid (N = 4096 -> two 2048-lane tiles), x-only branch
    x3 = jax.random.normal(ky, (2, 2048, 3), dtype=jnp.float32)
    out3 = jax.block_until_ready(positional_encoding(x3))
    assert jnp.allclose(out3, _ref_forward(x3), atol=1e-5, rtol=1e-5)

    # awkward N (N = 2208 -> tile shrinks to limit tail padding), x-only branch
    x4 = jax.random.normal(kx, (2208, 3), dtype=jnp.float32)
    out4 = jax.block_until_ready(positional_encoding(x4))
    assert jnp.allclose(out4, _ref_forward(x4), atol=1e-5, rtol=1e-5)

    print("KERNEL_OK")
</pallas_src>

<mosaic_0001>
module attributes {stable_mosaic.version = 11 : i64} {
  func.func @_pe_kernel_x(%arg0: i32, %arg1: memref<3x128xf32, #tpu.memory_space<vmem>>, %arg2: memref<33x128xf32, #tpu.memory_space<vmem>>) attributes {dimension_semantics = [#tpu.dimension_semantics<parallel>], iteration_bounds = array<i64: 1>, scalar_prefetch = 0 : i64, scratch_operands = 0 : i64, tpu.core_type = #tpu.core_type<tc>, window_params = [{transform_indices = @transform_0, window_bounds = array<i64: 3, 128>}, {transform_indices = @transform_1, window_bounds = array<i64: 33, 128>}]} {
    %c0 = arith.constant 0 : index
    %c0_0 = arith.constant 0 : index
    %0 = vector.load %arg1[%c0, %c0_0] : memref<3x128xf32, #tpu.memory_space<vmem>>, vector<3x128xf32>
    %cst = arith.constant 1.000000e+00 : f32
    %1 = vector.broadcast %cst : f32 to vector<3x128xf32>
    %2 = arith.mulf %0, %1 : vector<3x128xf32>
    %3 = math.sin %2 : vector<3x128xf32>
    %4 = math.cos %2 : vector<3x128xf32>
    %c0_1 = arith.constant 0 : index
    %c0_2 = arith.constant 0 : index
    %5 = vector.load %arg2[%c0_1, %c0_2] : memref<33x128xf32, #tpu.memory_space<vmem>>, vector<3x128xf32>
    tpu.vector_store %arg2[%c0_1, %c0_2], %3 {strides = array<i32>} : memref<33x128xf32, #tpu.memory_space<vmem>>, vector<3x128xf32>,
    %c15 = arith.constant 15 : index
    %c0_3 = arith.constant 0 : index
    %6 = vector.load %arg2[%c15, %c0_3] : memref<33x128xf32, #tpu.memory_space<vmem>>, vector<3x128xf32>
    tpu.vector_store %arg2[%c15, %c0_3], %4 {strides = array<i32>} : memref<33x128xf32, #tpu.memory_space<vmem>>, vector<3x128xf32>,
    %cst_4 = arith.constant 2.000000e+00 : f32
    %7 = vector.broadcast %cst_4 : f32 to vector<3x128xf32>
    %8 = arith.mulf %7, %3 : vector<3x128xf32>
    %9 = arith.mulf %8, %4 : vector<3x128xf32>
    %cst_5 = arith.constant 2.000000e+00 : f32
    %10 = vector.broadcast %cst_5 : f32 to vector<3x128xf32>
    %11 = arith.mulf %10, %3 : vector<3x128xf32>
    %12 = arith.mulf %11, %3 : vector<3x128xf32>
    %cst_6 = arith.constant 1.000000e+00 : f32
    %13 = vector.broadcast %cst_6 : f32 to vector<3x128xf32>
    %14 = arith.subf %13, %12 : vector<3x128xf32>
    %c3 = arith.constant 3 : index
    %c0_7 = arith.constant 0 : index
    %15 = vector.load %arg2[%c3, %c0_7] : memref<33x128xf32, #tpu.memory_space<vmem>>, vector<3x128xf32>
    tpu.vector_store %arg2[%c3, %c0_7], %9 {strides = array<i32>} : memref<33x128xf32, #tpu.memory_space<vmem>>, vector<3x128xf32>,
    %c18 = arith.constant 18 : index
    %c0_8 = arith.constant 0 : index
    %16 = vector.load %arg2[%c18, %c0_8] : memref<33x128xf32, #tpu.memory_space<vmem>>, vector<3x128xf32>
    tpu.vector_store %arg2[%c18, %c0_8], %14 {strides = array<i32>} : memref<33x128xf32, #tpu.memory_space<vmem>>, vector<3x128xf32>,
    %cst_9 = arith.constant 4.000000e+00 : f32
    %17 = vector.broadcast %cst_9 : f32 to vector<3x128xf32>
    %18 = arith.mulf %0, %17 : vector<3x128xf32>
    %19 = math.sin %18 : vector<3x128xf32>
    %20 = math.cos %18 : vector<3x128xf32>
    %c6 = arith.constant 6 : index
    %c0_10 = arith.constant 0 : index
    %21 = vector.load %arg2[%c6, %c0_10] : memref<33x128xf32, #tpu.memory_space<vmem>>, vector<3x128xf32>
    tpu.vector_store %arg2[%c6, %c0_10], %19 {strides = array<i32>} : memref<33x128xf32, #tpu.memory_space<vmem>>, vector<3x128xf32>,
    %c21 = arith.constant 21 : index
    %c0_11 = arith.constant 0 : index
    %22 = vector.load %arg2[%c21, %c0_11] : memref<33x128xf32, #tpu.memory_space<vmem>>, vector<3x128xf32>
    tpu.vector_store %arg2[%c21, %c0_11], %20 {strides = array<i32>} : memref<33x128xf32, #tpu.memory_space<vmem>>, vector<3x128xf32>,
    %cst_12 = arith.constant 2.000000e+00 : f32
    %23 = vector.broadcast %cst_12 : f32 to vector<3x128xf32>
    %24 = arith.mulf %23, %19 : vector<3x128xf32>
    %25 = arith.mulf %24, %20 : vector<3x128xf32>
    %cst_13 = arith.constant 2.000000e+00 : f32
    %26 = vector.broadcast %cst_13 : f32 to vector<3x128xf32>
    %27 = arith.mulf %26, %19 : vector<3x128xf32>
    %28 = arith.mulf %27, %19 : vector<3x128xf32>
    %cst_14 = arith.constant 1.000000e+00 : f32
    %29 = vector.broadcast %cst_14 : f32 to vector<3x128xf32>
    %30 = arith.subf %29, %28 : vector<3x128xf32>
    %c9 = arith.constant 9 : index
    %c0_15 = arith.constant 0 : index
    %31 = vector.load %arg2[%c9, %c0_15] : memref<33x128xf32, #tpu.memory_space<vmem>>, vector<3x128xf32>
    tpu.vector_store %arg2[%c9, %c0_15], %25 {strides = array<i32>} : memref<33x128xf32, #tpu.memory_space<vmem>>, vector<3x128xf32>,
    %c24 = arith.constant 24 : index
    %c0_16 = arith.constant 0 : index
    %32 = vector.load %arg2[%c24, %c0_16] : memref<33x128xf32, #tpu.memory_space<vmem>>, vector<3x128xf32>
    tpu.vector_store %arg2[%c24, %c0_16], %30 {strides = array<i32>} : memref<33x128xf32, #tpu.memory_space<vmem>>, vector<3x128xf32>,
    %cst_17 = arith.constant 1.600000e+01 : f32
    %33 = vector.broadcast %cst_17 : f32 to vector<3x128xf32>
    %34 = arith.mulf %0, %33 : vector<3x128xf32>
    %35 = math.sin %34 : vector<3x128xf32>
    %36 = math.cos %34 : vector<3x128xf32>
    %c12 = arith.constant 12 : index
    %c0_18 = arith.constant 0 : index
    %37 = vector.load %arg2[%c12, %c0_18] : memref<33x128xf32, #tpu.memory_space<vmem>>, vector<3x128xf32>
    tpu.vector_store %arg2[%c12, %c0_18], %35 {strides = array<i32>} : memref<33x128xf32, #tpu.memory_space<vmem>>, vector<3x128xf32>,
    %c27 = arith.constant 27 : index
    %c0_19 = arith.constant 0 : index
    %38 = vector.load %arg2[%c27, %c0_19] : memref<33x128xf32, #tpu.memory_space<vmem>>, vector<3x128xf32>
    tpu.vector_store %arg2[%c27, %c0_19], %36 {strides = array<i32>} : memref<33x128xf32, #tpu.memory_space<vmem>>, vector<3x128xf32>,
    %c30 = arith.constant 30 : index
    %c0_20 = arith.constant 0 : index
    %39 = vector.load %arg2[%c30, %c0_20] : memref<33x128xf32, #tpu.memory_space<vmem>>, vector<3x128xf32>
    tpu.vector_store %arg2[%c30, %c0_20], %0 {strides = array<i32>} : memref<33x128xf32, #tpu.memory_space<vmem>>, vector<3x128xf32>,
    return
  }
  func.func @transform_0(%arg0: i32) -> (i32, i32) {
    %c0_i32 = arith.constant 0 : i32
    %c0_i32_0 = arith.constant 0 : i32
    return %c0_i32, %arg0 : i32, i32
  }
  func.func @transform_1(%arg0: i32) -> (i32, i32) {
    %c0_i32 = arith.constant 0 : i32
    %c0_i32_0 = arith.constant 0 : i32
    return %c0_i32, %arg0 : i32, i32
  }
}

</mosaic_0001>

<bundles_post_ra>
// kernel: tpu_custom_call.1
= control target key start
LH: loop header
LB: loop body
LE: loop exit
PB: predicated region body
PF: predicated region fallthrough
CT: control target
= control target key end

     0   :  { %6 = vsyncpa [#allocation3], 0  ;;  %s982_s0 = inlined_call_operand.hbm [shape: f32[3,128], index: 0, kind: input, shape index: {}]   ;;  %s983_s1 = inlined_call_operand.hbm [shape: f32[33,128], index: 1, kind: output, shape index: {}]  }
   0x1   :  { %7 = vsyncpa [#allocation4], 0  ;;  %s783_s6 = smov [#allocation2]  }
   0x2   :  { %s14_s7 = sshll.u32 %s783_s6, 4  ;;  %s15_s7 = int_to_ptr.vmem [resolvable:$true] %s14_s7 }
   0x3   :  { %s747_s8 = scalar_lea.vmem %s15_s7, 64  ;;  %p752_p1 = scmp.lt.s32.totalorder %s15_s7, %s15_s7 }
   0x4   :  { %p748_p0 = scmp.ne.s32.totalorder %s15_s7, %s747_s8  ;;  %p753_p2 = scmp.lt.s32.totalorder %s747_s8, %s747_s8 }
   0x6   :  { %p754_p3 = por %p753_p2, %p752_p1 }
   0x8   :  { %p755_p4 = pnand %p754_p3, %p748_p0 }
   0xa   :  { %758 = shalt.err (!%p755_p4)
}
   0xb   :  { %17 = dma.hbm_to_vmem [thread:$0]  %s982_s0, 64, %s15_s7, [#allocation3]  }
   0xc   :  { %779 = dma.done.wait [#allocation3], 64  }
   0xd   :  { %780 = vsyncadd [#allocation3], 4294967232  ;;  %v806_v0 = vld [vmem:[#allocation2] sm:$0x7]  ;;  %v784_v26 = vmov 683565275  }
   0xe   :  { %v22_v1 = vand.u32 2147483647, %v806_v0  ;;  %v25_v2 = vand.u32 2139095040, %v806_v0  ;;  %663 = vst [vmem:[#allocation5 + $0x1e] sm:$0x7] %v806_v0  ;;  %v812_v3 = vmul.f32 4.0, %v806_v0 }
   0xf   :  { %v815_v4 = vmul.f32 16.0, %v806_v0  ;;  %v785_v28 = vmov 2475754826   ;;  %v786_v30 = vmov 2131351028   ;;  %s790_s0 = smov [#allocation5]  }
  0x10   :  { %v26_v5 = vshrl.u32 %v25_v2, 23  ;;  %v29_v6 = vand.u32 8388607, %v22_v1  ;;  %v238_v7 = vand.u32 2147483647, %v812_v3  ;;  %v241_v8 = vand.u32 2139095040, %v812_v3 }
  0x11   :  { %v457_v12 = vand.u32 2139095040, %v815_v4  ;;  %v787_v32 = vmov 2102212464   ;;  %v788_v34 = vmov 920167782   ;;  %s669_s11 = sshll.u32 %s790_s0, 4  ;;  %s670_s11 = int_to_ptr.vmem [resolvable:$true] %s669_s11 }
  0x12   :  { %v681_v9 = vadd.s32 4294967169, %v26_v5  ;;  %v242_v10 = vshrl.u32 %v241_v8, 23  ;;  %v245_v11 = vand.u32 8388607, %v238_v7  ;;  %v30_v14 = vor.u32 8388608, %v29_v6  ;;  %s759_s12 = scalar_lea.vmem %s670_s11, 640  ;;  %p764_p6 = scmp.lt.s32.totalorder %s670_s11, %s670_s11 }
  0x13   :  { %v458_v17 = vshrl.u32 %v457_v12, 23  ;;  %v789_v41 = vmov 1326507024   ;;  %p760_p5 = scmp.ne.s32.totalorder %s670_s11, %s759_s12  ;;  %p765_p7 = scmp.lt.s32.totalorder %s759_s12, %s759_s12 }
  0x14   :  { %v32_v13 = vadd.s32 1, %v681_v9  ;;  %v689_v15 = vadd.s32 4294967169, %v242_v10  ;;  %v246_v16 = vor.u32 8388608, %v245_v11  ;;  %v824_v22 = vshll.u32 %v30_v14, 8 }
  0x15   :  { %v828_v24 = vadd.s32 4294967169, %v458_v17  ;;  %p766_p8 = por %p765_p7, %p764_p6 }
  0x16   :  { %vm33_vm0 = vcmp.gt.s32.totalorder %v32_v13, 0  ;;  %v248_v19 = vadd.s32 1, %v689_v15  ;;  %v826_v23 = vshll.u32 %v246_v16, 8 }
  0x17   :  { %v34_v18 = vsel %vm33_vm0, %v32_v13, 0  ;;  %p767_p9 = pnand %p766_p8, %p760_p5 }
  0x18   :  { %v35_v20 = vshrl.u32 %v34_v18, 5  ;;  %v36_v21 = vand.u32 31, %v34_v18  ;;  %vm249_vm1 = vcmp.gt.s32.totalorder %v248_v19, 0 }
  0x19   :  { %v250_v46 = vsel %vm249_vm1, %v248_v19, 0 }
  0x1a   :  { %v37_v25 = vsub.s32 32, %v36_v21  ;;  %v39_v27 = vshll.u32 %v784_v26, %v36_v21  ;;  %v42_v29 = vshll.u32 %v785_v28, %v36_v21  ;;  %v45_v31 = vshll.u32 %v786_v30, %v36_v21 }
  0x1b   :  { %v48_v33 = vshll.u32 %v787_v32, %v36_v21  ;;  %v51_v35 = vshll.u32 %v788_v34, %v36_v21  ;;  %vm54_vm2 = vcmp.lt.s32.totalorder %v35_v20, 1  ;;  %vm55_vm3 = vcmp.lt.s32.totalorder %v35_v20, 2 }
  0x1c   :  { %v38_v36 = vshrl.u32 %v784_v26, %v37_v25  ;;  %v40_v37 = vshrl.u32 %v785_v28, %v37_v25  ;;  %v43_v38 = vshrl.u32 %v786_v30, %v37_v25  ;;  %v46_v39 = vshrl.u32 %v787_v32, %v37_v25 }
  0x1d   :  { %v49_v40 = vshrl.u32 %v788_v34, %v37_v25  ;;  %v52_v42 = vshrl.u32 %v789_v41, %v37_v25  ;;  %vm56_vm4 = vcmp.lt.s32.totalorder %v35_v20, 3  ;;  %vm57_vm5 = vcmp.lt.s32.totalorder %v35_v20, 4 }
  0x1e   :  { %v41_v43 = vor.u32 %v40_v37, %v39_v27  ;;  %v44_v44 = vor.u32 %v43_v38, %v42_v29  ;;  %v47_v45 = vor.u32 %v46_v39, %v45_v31  ;;  %v251_v49 = vshrl.u32 %v250_v46, 5 }
  0x1f   :  { %v50_v47 = vor.u32 %v49_v40, %v48_v33  ;;  %v53_v48 = vor.u32 %v52_v42, %v51_v35  ;;  %v252_v50 = vand.u32 31, %v250_v46  ;;  %v464_v29 = vadd.s32 1, %v828_v24 }
  0x20   :  { %v58_v51 = vsel %vm54_vm2, %v38_v36, %v41_v43  ;;  %v59_v52 = vsel %vm57_vm5, %v47_v45, 2102212464  ;;  %v62_v53 = vsel %vm54_vm2, %v41_v43, %v44_v44  ;;  %v66_v54 = vsel %vm54_vm2, %v44_v44, %v47_v45 }
  0x21   :  { %v60_v55 = vsel %vm56_vm4, %v44_v44, %v59_v52  ;;  %v63_v56 = vsel %vm57_vm5, %v50_v47, 920167782  ;;  %v67_v57 = vsel %vm57_vm5, %v53_v48, 1326507024  ;;  %v253_v58 = vsub.s32 32, %v252_v50 }
  0x22   :  { %v61_v59 = vsel %vm55_vm3, %v58_v51, %v60_v55  ;;  %v64_v60 = vsel %vm56_vm4, %v47_v45, %v63_v56  ;;  %v68_v61 = vsel %vm56_vm4, %v50_v47, %v67_v57  ;;  %v255_v62 = vshll.u32 %v784_v26, %v252_v50 }
  0x23   :  { %v65_v63 = vsel %vm55_vm3, %v62_v53, %v64_v60  ;;  %v69_v2 = vsel %vm55_vm3, %v66_v54, %v68_v61  ;;  %v77_v5 = vmul.u32 %v824_v22, %v61_v59  ;;  %v254_v6 = vshrl.u32 %v784_v26, %v253_v58 }
  0x24   :  { %v855_v8 = vmul.u32.u64.low %v824_v22, %v69_v2  ;;  %v856_v9 = vmul.u32.u64.high %v824_v22, %v69_v2, %v855_v8  ;;  %v859_v10 = vmul.u32.u64.low %v824_v22, %v65_v63  ;;  %v860_v11 = vmul.u32.u64.high %v824_v22, %v65_v63, %v859_v10 }
  0x25   :  { %v256_v12 = vshrl.u32 %v785_v28, %v253_v58  ;;  %v258_v13 = vshll.u32 %v785_v28, %v252_v50  ;;  %v259_v14 = vshrl.u32 %v786_v30, %v253_v58  ;;  %v261_v15 = vshll.u32 %v786_v30, %v252_v50 }
  0x26   :  { %v262_v16 = vshrl.u32 %v787_v32, %v253_v58  ;;  %v264_v17 = vshll.u32 %v787_v32, %v252_v50  ;;  %v265_v18 = vshrl.u32 %v788_v34, %v253_v58  ;;  %v267_v19 = vshll.u32 %v788_v34, %v252_v50 }
  0x27   :  { %v257_v20 = vor.u32 %v256_v12, %v255_v62  ;;  %v260_v21 = vor.u32 %v259_v14, %v258_v13  ;;  %v268_v22 = vshrl.u32 %v789_v41, %v253_v58  ;;  %vm270_vm6 = vcmp.lt.s32.totalorder %v251_v49, 1 }
  0x28   :  { %vm79_vm7 = vc.u32 %v856_v9, %v859_v10  ;;  %v80_v25 = vadd.s32 1, %v860_v11  ;;  %v263_v27 = vor.u32 %v262_v16, %v261_v15  ;;  %v266_v31 = vor.u32 %v265_v18, %v264_v17 }
  0x29   :  { %v269_v33 = vor.u32 %v268_v22, %v267_v19  ;;  %vm271_vm8 = vcmp.lt.s32.totalorder %v251_v49, 2  ;;  %vm272_vm9 = vcmp.lt.s32.totalorder %v251_v49, 3  ;;  %vm273_vm10 = vcmp.lt.s32.totalorder %v251_v49, 4 }
  0x2a   :  { %v81_v35 = vsel %vm79_vm7, %v80_v25, %v860_v11  ;;  %v274_v36 = vsel %vm270_vm6, %v254_v6, %v257_v20  ;;  %v278_v37 = vsel %vm270_vm6, %v257_v20, %v260_v21  ;;  %v275_v39 = vsel %vm273_vm10, %v263_v27, 2102212464 }
  0x2b   :  { %v82_v38 = vadd.s32 %v81_v35, %v77_v5  ;;  %v279_v40 = vsel %vm273_vm10, %v266_v31, 920167782  ;;  %v282_v42 = vsel %vm270_vm6, %v260_v21, %v263_v27  ;;  %v276_v43 = vsel %vm272_vm9, %v260_v21, %v275_v39 }
  0x2c   :  { %v280_v44 = vsel %vm272_vm9, %v263_v27, %v279_v40  ;;  %v283_v45 = vsel %vm273_vm10, %v269_v33, 1326507024  ;;  %vm465_vm11 = vcmp.gt.s32.totalorder %v464_v29, 0  ;;  %v277_v48 = vsel %vm271_vm8, %v274_v36, %v276_v43 }
  0x2d   :  { %v83_v24 = vadd.s32 536870912, %v82_v38  ;;  %v281_v46 = vsel %vm271_vm8, %v278_v37, %v280_v44  ;;  %v284_v47 = vsel %vm272_vm9, %v266_v31, %v283_v45  ;;  %v466_v56 = vsel %vm465_vm11, %v464_v29, 0 }
  0x2e   :  { %v285_v50 = vsel %vm271_vm8, %v282_v42, %v284_v47  ;;  %v884_v51 = vmul.u32.u64.low %v826_v23, %v281_v46  ;;  %v885_v52 = vmul.u32.u64.high %v826_v23, %v281_v46, %v884_v51  ;;  %v468_v57 = vand.u32 31, %v466_v56 }
  0x2f   :  { %v888_v53 = vshrl.u32 %v83_v24, 30  ;;  %v891_v54 = vmul.u32.u64.low %v826_v23, %v285_v50  ;;  %v892_v55 = vmul.u32.u64.high %v826_v23, %v285_v50, %v891_v54  ;;  %v293_v59 = vmul.u32 %v826_v23, %v277_v48 }
  0x30   :  { %v296_v49 = vadd.s32 1, %v885_v52  ;;  %v454_v61 = vand.u32 2147483647, %v815_v4  ;;  %v469_v63 = vsub.s32 32, %v468_v57  ;;  %v471_v23 = vshll.u32 %v784_v26, %v468_v57 }
  0x31   :  { %v85_v58 = vshll.u32 %v888_v53, 30  ;;  %vm295_vm12 = vc.u32 %v892_v55, %v884_v51  ;;  %v474_v13 = vshll.u32 %v785_v28, %v468_v57  ;;  %v477_v16 = vshll.u32 %v786_v30, %v468_v57 }
  0x32   :  { %v297_v62 = vsel %vm295_vm12, %v296_v49, %v885_v52  ;;  %v461_v8 = vand.u32 8388607, %v454_v61  ;;  %v472_v12 = vshrl.u32 %v785_v28, %v469_v63  ;;  %v475_v15 = vshrl.u32 %v786_v30, %v469_v63 }
  0x33   :  { %v86_v60 = vsub.s32 %v82_v38, %v85_v58  ;;  %v298_v5 = vadd.s32 %v297_v62, %v293_v59  ;;  %v478_v17 = vshrl.u32 %v787_v32, %v469_v63  ;;  %v480_v20 = vshll.u32 %v787_v32, %v468_v57 }
  0x34   :  { %v481_v21 = vshrl.u32 %v788_v34, %v469_v63  ;;  %v78_v22 = vadd.s32 %v859_v10, %v856_v9  ;;  %v462_v28 = vor.u32 8388608, %v461_v8  ;;  %v467_v27 = vshrl.u32 %v466_v56, 5 }
  0x35   :  { %v88_v2 = vsub.s32 0, %v86_v60  ;;  %v299_v11 = vadd.s32 536870912, %v298_v5  ;;  %v473_v29 = vor.u32 %v472_v12, %v471_v23  ;;  %v476_v31 = vor.u32 %v475_v15, %v474_v13 }
  0x36   :  { %v479_v30 = vor.u32 %v478_v17, %v477_v16  ;;  %v483_v36 = vshll.u32 %v788_v34, %v468_v57  ;;  %v484_v37 = vshrl.u32 %v789_v41, %v469_v63  ;;  %v482_v40 = vor.u32 %v481_v21, %v480_v20 }
  0x37   :  { %v682_v6 = vmin.u32 %v88_v2, %v86_v60  ;;  %v909_v18 = vshrl.u32 %v299_v11, 30  ;;  %v470_v9 = vshrl.u32 %v784_v26, %v469_v63  ;;  %vm486_vm14 = vcmp.lt.s32.totalorder %v467_v27, 1 }
  0x38   :  { %vm489_vm15 = vcmp.lt.s32.totalorder %v467_v27, 4  ;;  %v502_v45 = vshll.u32 %v462_v28, 8  ;;  %v485_v46 = vor.u32 %v484_v37, %v483_v36  ;;  %vm487_vm0 = vcmp.lt.s32.totalorder %v467_v27, 2 }
  0x39   :  { %v90_v14 = vclz %v682_v6  ;;  %v301_v25 = vshll.u32 %v909_v18, 30  ;;  %v491_v44 = vsel %vm489_vm15, %v479_v30, 2102212464  ;;  %vm488_vm1 = vcmp.lt.s32.totalorder %v467_v27, 3 }
  0x3a   :  { %v494_v47 = vsel %vm486_vm14, %v473_v29, %v476_v31  ;;  %v495_v48 = vsel %vm489_vm15, %v482_v40, 920167782  ;;  %v490_v26 = vsel %vm486_vm14, %v470_v9, %v473_v29  ;;  %v492_v52 = vsel %vm488_vm1, %v476_v31, %v491_v44 }
  0x3b   :  { %v683_v19 = vadd.s32 4294967294, %v90_v14  ;;  %v302_v35 = vsub.s32 %v298_v5, %v301_v25  ;;  %v496_v57 = vsel %vm488_vm1, %v479_v30, %v495_v48  ;;  %v498_v58 = vsel %vm486_vm14, %v476_v31, %v479_v30 }
  0x3c   :  { %v108_v59 = vsub.s32 4, %v888_v53  ;;  %v499_v62 = vsel %vm489_vm15, %v485_v46, 1326507024  ;;  %v294_v8 = vadd.s32 %v884_v51, %v892_v55  ;;  %v493_v11 = vsel %vm487_vm0, %v490_v26, %v492_v52 }
  0x3d   :  { %vm684_vm13 = vcmp.lt.s32.totalorder %v683_v19, 0  ;;  %v304_v42 = vsub.s32 0, %v302_v35  ;;  %v500_v2 = vsel %vm488_vm1, %v482_v40, %v499_v62  ;;  %vm24_vm3 = vcmp.lt.s32.totalorder %v806_v0, 0 }
  0x3e   :  { %v93_v33 = vsel %vm684_vm13, 0, %v683_v19  ;;  %v501_v23 = vsel %vm487_vm0, %v498_v58, %v500_v2  ;;  %vm944_vm4 = vcmp.le.f32.partialorder %v22_v1, 0.7853982  ;;  %v509_v55 = vmul.u32 %v502_v45, %v493_v11 }
  0x3f   :  { %v94_v32 = vsub.s32 32, %v93_v33  ;;  %v95_v38 = vshll.u32 %v86_v60, %v93_v33  ;;  %v98_v39 = vsub.s32 4294967266, %v93_v33  ;;  %v690_v24 = vmin.u32 %v304_v42, %v302_v35 }
  0x40   :  { %v497_v60 = vsel %vm487_vm0, %v494_v47, %v496_v57  ;;  %v938_v14 = vmul.u32.u64.low %v502_v45, %v501_v23  ;;  %v939_v15 = vmul.u32.u64.high %v502_v45, %v501_v23, %v938_v14  ;;  %v109_v27 = vsel %vm24_vm3, %v108_v59, %v888_v53 }
  0x41   :  { %v96_v10 = vshrl.u32 %v78_v22, %v94_v32  ;;  %v99_v43 = vadd.s32 127, %v98_v39  ;;  %v306_v50 = vclz %v690_v24  ;;  %v111_v37 = vsel %vm944_vm4, 0, %v109_v27 }
  0x42   :  { %v930_v5 = vmul.u32.u64.low %v502_v45, %v497_v60  ;;  %v931_v6 = vmul.u32.u64.high %v502_v45, %v497_v60, %v930_v5  ;;  %v115_v39 = vadd.s32 3, %v111_v37  ;;  %v324_v42 = vsub.s32 4, %v909_v18 }
  0x43   :  { %v97_v34 = vor.u32 %v96_v10, %v95_v38  ;;  %v100_v41 = vshll.u32 %v99_v43, 23  ;;  %v691_v49 = vadd.s32 4294967294, %v306_v50  ;;  %vm240_vm6 = vcmp.lt.s32.totalorder %v812_v3, 0 }
  0x44   :  { %v512_v21 = vadd.s32 1, %v931_v6  ;;  %vm511_vm5 = vc.u32 %v939_v15, %v930_v5  ;;  %vm239_vm7 = vcmp.le.f32.partialorder %v238_v7, 0.7853982  ;;  %v116_v44 = vand.u32 3, %v115_v39 }
  0x45   :  { %v101_v54 = vor.u32 4788187, %v100_v41  ;;  %v104_v56 = vcvt.s32.f32 %v97_v34  ;;  %vm692_vm2 = vcmp.lt.s32.totalorder %v691_v49, 0  ;;  %v219_v45 = vand.u32 3, %v111_v37 }
  0x46   :  { %v309_v13 = vsel %vm692_vm2, 0, %v691_v49  ;;  %v513_v30 = vsel %vm511_vm5, %v512_v21, %v931_v6  ;;  %v325_v46 = vsel %vm240_vm6, %v324_v42, %v909_v18  ;;  %vm121_vm8 = vcmp.eq.s32.totalorder %v116_v44, 2 }
  0x47   :  { %v102_v63 = vand.u32 2147483647, %v101_v54  ;;  %v310_v16 = vsub.s32 32, %v309_v13  ;;  %v311_v17 = vshll.u32 %v302_v35, %v309_v13  ;;  %v314_v19 = vsub.s32 4294967266, %v309_v13 }
  0x48   :  { %v514_v33 = vadd.s32 %v513_v30, %v509_v55  ;;  %v327_v47 = vsel %vm239_vm7, 0, %v325_v46  ;;  %vm224_vm9 = vcmp.eq.s32.totalorder %v219_v45, 2  ;;  %vm118_vm10 = vcmp.eq.s32.totalorder %v116_v44, 0 }
  0x49   :  { %v105_v12 = vmul.f32 %v104_v56, %v102_v63  ;;  %v312_v22 = vshrl.u32 %v294_v8, %v310_v16  ;;  %v315_v25 = vadd.s32 127, %v314_v19  ;;  %vm221_vm11 = vcmp.eq.s32.totalorder %v219_v45, 0 }
  0x4a   :  { %v515_v53 = vadd.s32 536870912, %v514_v33  ;;  %vm117_vm12 = vcmp.lt.s32.totalorder %v116_v44, 2  ;;  %vm220_vm13 = vcmp.lt.s32.totalorder %v219_v45, 2  ;;  %v331_v56 = vadd.s32 3, %v327_v47 }
  0x4b   :  { %v106_v51 = vxor.u32 2147483648, %v105_v12  ;;  %v313_v1 = vor.u32 %v312_v22, %v311_v17  ;;  %v316_v31 = vshll.u32 %v315_v25, 23  ;;  %vm114_vm14 = vweird.f32 %v806_v0 }
  0x4c   :  { %v958_v38 = vshrl.u32 %v515_v53, 30  ;;  %v435_v60 = vand.u32 3, %v327_v47  ;;  %v510_v2 = vadd.s32 %v930_v5, %v939_v15  ;;  %v332_v11 = vand.u32 3, %v331_v56 }
  0x4d   :  { %v107_v28 = vsel %vm24_vm3, %v106_v51, %v105_v12  ;;  %v317_v35 = vor.u32 4788187, %v316_v31  ;;  %v320_v36 = vcvt.s32.f32 %v313_v1 }
  0x4e   :  { %v110_v29 = vsel %vm944_vm4, %v806_v0, %v107_v28  ;;  %v517_v9 = vshll.u32 %v958_v38, 30  ;;  %vm440_vm0 = vcmp.eq.s32.totalorder %v435_v60, 2  ;;  %vm337_vm1 = vcmp.eq.s32.totalorder %v332_v11, 2 }
  0x4f   :  { %727 = vcosq.f32 %v110_v29  ;;  %v318_v32 = vand.u32 2147483647, %v317_v35  ;;  %vm334_vm2 = vcmp.eq.s32.totalorder %v332_v11, 0  ;;  %vm436_vm3 = vcmp.lt.s32.totalorder %v435_v60, 2 }
  0x50   :  { %729 = vsinq.f32 %v110_v29  ;;  %v518_v43 = vsub.s32 %v514_v33, %v517_v9  ;;  %vm437_vm4 = vcmp.eq.s32.totalorder %v435_v60, 0  ;;  %vm333_vm5 = vcmp.lt.s32.totalorder %v332_v11, 2 }
  0x51   :  { %v321_v40 = vmul.f32 %v320_v36, %v318_v32 }
  0x52   :  { %v520_v41 = vsub.s32 0, %v518_v43 }
  0x53   :  { %v322_v10 = vxor.u32 2147483648, %v321_v40 }
  0x54   :  { %v698_v48 = vmin.u32 %v520_v41, %v518_v43 }
  0x55   :  { %v323_v24 = vsel %vm240_vm6, %v322_v10, %v321_v40  ;;  %vm330_vm6 = vweird.f32 %v812_v3  ;;  %v540_v40 = vsub.s32 4, %v958_v38 }
  0x56   :  { %v326_v34 = vsel %vm239_vm7, %v812_v3, %v323_v24  ;;  %v522_v52 = vclz %v698_v48  ;;  %vm456_vm7 = vcmp.lt.s32.totalorder %v815_v4, 0 }
  0x57   :  { %731 = vcosq.f32 %v326_v34  ;;  %v541_v44 = vsel %vm456_vm7, %v540_v40, %v958_v38 }
  0x58   :  { %733 = vsinq.f32 %v326_v34  ;;  %v699_v58 = vadd.s32 4294967294, %v522_v52 }
  0x5a   :  { %vm700_vm15 = vcmp.lt.s32.totalorder %v699_v58, 0 }
  0x5b   :  { %v525_v23 = vsel %vm700_vm15, 0, %v699_v58  ;;  %vm546_vm15 = vweird.f32 %v815_v4 }
  0x5c   :  { %v728_v50 = vpop.eup %727  ;;  %v526_v0 = vsub.s32 32, %v525_v23  ;;  %v527_v13 = vshll.u32 %v518_v43, %v525_v23  ;;  %v530_v14 = vsub.s32 4294967266, %v525_v23 }
  0x5d   :  { %v730_v26 = vpop.eup %729  ;;  %v122_v7 = vxor.u32 2147483648, %v728_v50 }
  0x5e   :  { %v119_v54 = vxor.u32 2147483648, %v730_v26  ;;  %v528_v19 = vshrl.u32 %v510_v2, %v526_v0  ;;  %v531_v20 = vadd.s32 127, %v530_v14 }
  0x5f   :  { %v123_v18 = vsel %vm121_vm8, %v122_v7, %v730_v26  ;;  %v226_v57 = vsel %vm224_vm9, %v122_v7, %v730_v26  ;;  %vm455_vm8 = vcmp.le.f32.partialorder %v454_v61, 0.7853982 }
  0x60   :  { %v120_v59 = vsel %vm118_vm10, %v728_v50, %v119_v54  ;;  %v223_v49 = vsel %vm221_vm11, %v728_v50, %v119_v54  ;;  %v529_v5 = vor.u32 %v528_v19, %v527_v13  ;;  %v532_v15 = vshll.u32 %v531_v20, 23 }
  0x61   :  { %v124_v62 = vsel %vm117_vm12, %v120_v59, %v123_v18  ;;  %v227_v63 = vsel %vm220_vm13, %v223_v49, %v226_v57  ;;  %v543_v24 = vsel %vm455_vm8, 0, %v541_v44 }
  0x62   :  { %v125_v6 = vsel %vm114_vm14, nan, %v124_v62  ;;  %v228_v8 = vsel %vm114_vm14, nan, %v227_v63  ;;  %v533_v28 = vor.u32 4788187, %v532_v15  ;;  %v536_v27 = vcvt.s32.f32 %v529_v5 }
  0x63   :  { %229 = vst [vmem:[#allocation5] sm:$0x7] %v125_v6  ;;  %230 = vst [vmem:[#allocation5 + $0xf] sm:$0x7] %v228_v8  ;;  %v231_v12 = vmul.f32 2.0, %v125_v6  ;;  %v547_v46 = vadd.s32 3, %v543_v24 }
  0x64   :  { %v732_v51 = vpop.eup %731  ;;  %v534_v33 = vand.u32 2147483647, %v533_v28  ;;  %v651_v41 = vand.u32 3, %v543_v24 }
  0x65   :  { %v232_v16 = vmul.f32 %v231_v12, %v228_v8  ;;  %v233_v17 = vmul.f32 %v231_v12, %v125_v6  ;;  %v734_v21 = vpop.eup %733  ;;  %v338_v22 = vxor.u32 2147483648, %v732_v51  ;;  %v548_v34 = vand.u32 3, %v547_v46 }
  0x66   :  { %v335_v25 = vxor.u32 2147483648, %v734_v21  ;;  %v537_v32 = vmul.f32 %v536_v27, %v534_v33  ;;  %vm656_vm10 = vcmp.eq.s32.totalorder %v651_v41, 2  ;;  %vm653_vm12 = vcmp.eq.s32.totalorder %v651_v41, 0 }
  0x67   :  { %235 = vst [vmem:[#allocation5 + $0x3] sm:$0x7] %v232_v16  ;;  %v234_v55 = vsub.f32 1.0, %v233_v17  ;;  %v339_v29 = vsel %vm337_vm1, %v338_v22, %v734_v21  ;;  %v442_v1 = vsel %vm440_vm0, %v338_v22, %v734_v21  ;;  %vm553_vm9 = vcmp.eq.s32.totalorder %v548_v34, 2 }
  0x68   :  { %v336_v31 = vsel %vm334_vm2, %v732_v51, %v335_v25  ;;  %v439_v30 = vsel %vm437_vm4, %v732_v51, %v335_v25  ;;  %v538_v3 = vxor.u32 2147483648, %v537_v32  ;;  %vm550_vm11 = vcmp.eq.s32.totalorder %v548_v34, 0 }
  0x69   :  { %236 = vst [vmem:[#allocation5 + $0x12] sm:$0x7] %v234_v55  ;;  %v340_v35 = vsel %vm333_vm5, %v336_v31, %v339_v29  ;;  %v443_v36 = vsel %vm436_vm3, %v439_v30, %v442_v1  ;;  %vm549_vm13 = vcmp.lt.s32.totalorder %v548_v34, 2  ;;  %vm652_vm14 = vcmp.lt.s32.totalorder %v651_v41, 2 }
  0x6a   :  { %v341_v37 = vsel %vm330_vm6, nan, %v340_v35  ;;  %v444_v53 = vsel %vm330_vm6, nan, %v443_v36  ;;  %v539_v10 = vsel %vm456_vm7, %v538_v3, %v537_v32 }
  0x6b   :  { %445 = vst [vmem:[#allocation5 + $0x6] sm:$0x7] %v341_v37  ;;  %446 = vst [vmem:[#allocation5 + $0x15] sm:$0x7] %v444_v53  ;;  %v447_v39 = vmul.f32 2.0, %v341_v37  ;;  %v542_v45 = vsel %vm455_vm8, %v815_v4, %v539_v10 }
  0x6c   :  { %735 = vcosq.f32 %v542_v45 }
  0x6d   :  { %v448_v42 = vmul.f32 %v447_v39, %v444_v53  ;;  %v449_v9 = vmul.f32 %v447_v39, %v341_v37  ;;  %737 = vsinq.f32 %v542_v45 }
  0x6f   :  { %451 = vst [vmem:[#allocation5 + $0x9] sm:$0x7] %v448_v42  ;;  %v450_v43 = vsub.f32 1.0, %v449_v9 }
  0x71   :  { %452 = vst [vmem:[#allocation5 + $0x18] sm:$0x7] %v450_v43 }
  0x79   :  { %v736_v47 = vpop.eup %735 }
  0x7a   :  { %v738_v61 = vpop.eup %737  ;;  %v554_v48 = vxor.u32 2147483648, %v736_v47 }
  0x7b   :  { %v551_v50 = vxor.u32 2147483648, %v738_v61 }
  0x7c   :  { %v555_v38 = vsel %vm553_vm9, %v554_v48, %v738_v61  ;;  %v658_v26 = vsel %vm656_vm10, %v554_v48, %v738_v61 }
  0x7d   :  { %v552_v7 = vsel %vm550_vm11, %v736_v47, %v551_v50  ;;  %v655_v52 = vsel %vm653_vm12, %v736_v47, %v551_v50 }
  0x7e   :  { %v556_v54 = vsel %vm549_vm13, %v552_v7, %v555_v38  ;;  %v659_v56 = vsel %vm652_vm14, %v655_v52, %v658_v26 }
  0x7f   :  { %v557_v18 = vsel %vm546_vm15, nan, %v556_v54  ;;  %v660_v57 = vsel %vm546_vm15, nan, %v659_v56 }
  0x80   :  { %661 = vst [vmem:[#allocation5 + $0xc] sm:$0x7] %v557_v18  ;;  %662 = vst [vmem:[#allocation5 + $0x1b] sm:$0x7] %v660_v57 }
  0x81   :  { %770 = shalt.err (!%p767_p9)
}
  0x82   :  { %s791_s13 = smov 128   ;;  %s792_s14 = smov 8  }
  0x83   :  { %675 = dma.vmem_to_hbm [thread:$0]  %s670_s11, 640, %s983_s1, [#allocation4], %s791_s13, %s791_s13, %s792_s14  }
  0x84   :  { %781 = dma.done.wait [#allocation4], 640  }
  0x85   :  { %782 = vsyncadd [#allocation4], 4294966656 }
  0x86   :  { %679 = vsyncpa [#allocation3], 1 }
  0x87   :  { %680 = vsyncpa [#allocation4], 1 }

</bundles_post_ra>
